<compile_context>
chip_gen: v7x
topology: tpu7x:2x2x1
jax: 0.10.0
libtpu: 0.0.40
codegen_flags: <defaults>
</compile_context>

<pallas_src>
import functools

import jax
import jax.numpy as jnp
from jax.experimental import pallas as pl
from jax.experimental.pallas import tpu as pltpu


def _round_up(x, m):
    return ((x + m - 1) // m) * m


def mlp_relu_kernel(x_ref, w1_ref, w2_ref, w3_ref, b_ref, o_ref, *, h1p, h2p):
    x = x_ref[...]
    # layer 1: Linear + ReLU  (MXU matmul, f32 accumulate)
    h1 = jnp.dot(x, w1_ref[...], preferred_element_type=jnp.float32)
    h1 = jnp.maximum(h1 + b_ref[:, 0:h1p], 0.0)
    # layer 2: Linear + ReLU
    h2 = jnp.dot(h1, w2_ref[...], preferred_element_type=jnp.float32)
    h2 = jnp.maximum(h2 + b_ref[:, h1p:h1p + h2p], 0.0)
    # layer 3: Linear (no activation); output tile is 128-lane dense
    out = jnp.dot(h2, w3_ref[...], preferred_element_type=jnp.float32)
    out = out + b_ref[:, h1p + h2p:]
    o_ref[...] = out.astype(o_ref.dtype)


@functools.partial(jax.jit, static_argnames=("block_b",))
def net_relu_forward(x, w1, b1, w2, b2, w3, b3, *, block_b=512):
    """Fused 3-layer MLP forward.  Weights are (in, out); biases (out,)."""
    B, D_in = x.shape
    H1 = w1.shape[1]
    H2 = w2.shape[1]
    D_out = w3.shape[1]

    # --- pad feature dims to 128 lanes (exact: zero rows/cols contribute 0) ---
    Dp = _round_up(D_in, 128)
    H1p = _round_up(H1, 128)
    H2p = _round_up(H2, 128)
    Dop = _round_up(D_out, 128)

    # --- batch tiling (sublane-aligned) ---
    TB = min(block_b, _round_up(B, 8))
    Bp = _round_up(B, TB)
    grid = (Bp // TB,)

    f32 = jnp.float32
    xp = jnp.pad(x.astype(f32), ((0, Bp - B), (0, Dp - D_in)))
    w1p = jnp.pad(w1.astype(f32), ((0, Dp - D_in), (0, H1p - H1)))
    w2p = jnp.pad(w2.astype(f32), ((0, H1p - H1), (0, H2p - H2)))
    w3p = jnp.pad(w3.astype(f32), ((0, H2p - H2), (0, Dop - D_out)))

    # pack the three biases into a single lane-padded row -> one small DMA
    bp = jnp.concatenate(
        [
            jnp.pad(b1.reshape(-1).astype(f32), (0, H1p - H1)),
            jnp.pad(b2.reshape(-1).astype(f32), (0, H2p - H2)),
            jnp.pad(b3.reshape(-1).astype(f32), (0, Dop - D_out)),
        ]
    ).reshape(1, H1p + H2p + Dop)

    resident = lambda shape: pl.BlockSpec(shape, lambda i: (0, 0))

    # VMEM budget: double-buffered x/out tiles + live intermediates + params
    # (+ headroom), capped at 64 MiB so it stays valid on v7x.
    vmem_bytes = 4 * (
        2 * TB * (Dp + Dop)                        # pipelined x / out tiles
        + 2 * TB * (H1p + H2p)                     # h1 / h2 live values
        + 2 * (Dp * H1p + H1p * H2p + H2p * Dop)   # resident weights (x2 bufs)
        + 2 * (H1p + H2p + Dop)                    # packed bias
    ) + (8 << 20)                                  # compiler headroom
    vmem_bytes = min(int(vmem_bytes), 64 << 20)

    out_padded = pl.pallas_call(
        functools.partial(mlp_relu_kernel, h1p=H1p, h2p=H2p),
        out_shape=jax.ShapeDtypeStruct((Bp, Dop), f32),
        grid=grid,
        in_specs=[
            pl.BlockSpec((TB, Dp), lambda i: (i, 0)),      # x: tiled over batch
            resident((Dp, H1p)),                           # w1 (VMEM-resident)
            resident((H1p, H2p)),                          # w2
            resident((H2p, Dop)),                          # w3
            resident((1, H1p + H2p + Dop)),                # packed biases
        ],
        out_specs=pl.BlockSpec((TB, Dop), lambda i: (i, 0)),
        compiler_params=pltpu.CompilerParams(
            dimension_semantics=("parallel",),
            vmem_limit_bytes=vmem_bytes,
        ),
    )(xp, w1p, w2p, w3p, bp)

    return out_padded[:B, :D_out]


def init_linear(key, fan_in, fan_out):
    """PyTorch nn.Linear default init: U(-1/sqrt(fan_in), 1/sqrt(fan_in))."""
    kw, kb = jax.random.split(key)
    bound = 1.0 / jnp.sqrt(jnp.float32(fan_in))
    # stored as (in, out) so the kernel does x @ W + b
    w = jax.random.uniform(kw, (fan_in, fan_out), jnp.float32, -bound, bound)
    b = jax.random.uniform(kb, (fan_out,), jnp.float32, -bound, bound)
    return w, b


if __name__ == "__main__":
    # Small shapes consistent with the module: D_in=32, H1=64, H2=32, D_out=8
    B, D_in, H1, H2, D_out = 8, 32, 64, 32, 8

    key = jax.random.PRNGKey(0)
    kx, k1, k2, k3 = jax.random.split(key, 4)

    x = jax.random.normal(kx, (B, D_in), jnp.float32)
    w1, b1 = init_linear(k1, D_in, H1)
    w2, b2 = init_linear(k2, H1, H2)
    w3, b3 = init_linear(k3, H2, D_out)

    out = net_relu_forward(x, w1, b1, w2, b2, w3, b3)
    out = jax.block_until_ready(out)

    # Pure-JAX reference of the same forward pass
    ref = jnp.maximum(x @ w1 + b1, 0.0)
    ref = jnp.maximum(ref @ w2 + b2, 0.0)
    ref = ref @ w3 + b3

    assert out.shape == (B, D_out)
    assert jnp.allclose(out, ref, atol=1e-4, rtol=1e-4), float(
        jnp.max(jnp.abs(out - ref))
    )

    print("KERNEL_OK")
</pallas_src>

<mosaic_0001>
module attributes {stable_mosaic.version = 11 : i64} {
  func.func @mlp_relu_kernel(%arg0: i32, %arg1: memref<8x128xf32, #tpu.memory_space<vmem>>, %arg2: memref<128x128xf32, #tpu.memory_space<vmem>>, %arg3: memref<128x128xf32, #tpu.memory_space<vmem>>, %arg4: memref<128x128xf32, #tpu.memory_space<vmem>>, %arg5: memref<1x384xf32, #tpu.memory_space<vmem>>, %arg6: memref<8x128xf32, #tpu.memory_space<vmem>>) attributes {dimension_semantics = [#tpu.dimension_semantics<parallel>], iteration_bounds = array<i64: 1>, scalar_prefetch = 0 : i64, scratch_operands = 0 : i64, tpu.core_type = #tpu.core_type<tc>, window_params = [{transform_indices = @transform_0, window_bounds = array<i64: 8, 128>}, {pipeline_mode = #tpu.pipeline_mode<synchronous>, transform_indices = @transform_1, window_bounds = array<i64: 128, 128>}, {pipeline_mode = #tpu.pipeline_mode<synchronous>, transform_indices = @transform_2, window_bounds = array<i64: 128, 128>}, {pipeline_mode = #tpu.pipeline_mode<synchronous>, transform_indices = @transform_3, window_bounds = array<i64: 128, 128>}, {pipeline_mode = #tpu.pipeline_mode<synchronous>, transform_indices = @transform_4, window_bounds = array<i64: 1, 384>}, {transform_indices = @transform_5, window_bounds = array<i64: 8, 128>}]} {
    %c0 = arith.constant 0 : index
    %c0_0 = arith.constant 0 : index
    %0 = vector.load %arg1[%c0, %c0_0] : memref<8x128xf32, #tpu.memory_space<vmem>>, vector<8x128xf32>
    %c0_1 = arith.constant 0 : index
    %c0_2 = arith.constant 0 : index
    %1 = vector.load %arg2[%c0_1, %c0_2] : memref<128x128xf32, #tpu.memory_space<vmem>>, vector<128x128xf32>
    %cst = arith.constant dense<0.000000e+00> : vector<8x128xf32>
    %2 = tpu.matmul %0, %1, %cst {dimension_numbers = #tpu.dot_dimension_numbers<[1], [0], [0], [1], [0, 0, 1, 1], [], []>} : vector<8x128xf32>, vector<128x128xf32>, vector<8x128xf32> -> vector<8x128xf32>
    %c0_3 = arith.constant 0 : index
    %c0_4 = arith.constant 0 : index
    %3 = vector.load %arg5[%c0_3, %c0_4] : memref<1x384xf32, #tpu.memory_space<vmem>>, vector<1x128xf32>
    %4 = vector.broadcast %3 : vector<1x128xf32> to vector<8x128xf32>
    %5 = arith.addf %2, %4 : vector<8x128xf32>
    %cst_5 = arith.constant 0.000000e+00 : f32
    %6 = vector.broadcast %cst_5 : f32 to vector<8x128xf32>
    %7 = arith.maximumf %5, %6 : vector<8x128xf32>
    %c0_6 = arith.constant 0 : index
    %c0_7 = arith.constant 0 : index
    %8 = vector.load %arg3[%c0_6, %c0_7] : memref<128x128xf32, #tpu.memory_space<vmem>>, vector<128x128xf32>
    %cst_8 = arith.constant dense<0.000000e+00> : vector<8x128xf32>
    %9 = tpu.matmul %7, %8, %cst_8 {dimension_numbers = #tpu.dot_dimension_numbers<[1], [0], [0], [1], [0, 0, 1, 1], [], []>} : vector<8x128xf32>, vector<128x128xf32>, vector<8x128xf32> -> vector<8x128xf32>
    %c0_9 = arith.constant 0 : index
    %c128 = arith.constant 128 : index
    %10 = vector.load %arg5[%c0_9, %c128] : memref<1x384xf32, #tpu.memory_space<vmem>>, vector<1x128xf32>
    %11 = vector.broadcast %10 : vector<1x128xf32> to vector<8x128xf32>
    %12 = arith.addf %9, %11 : vector<8x128xf32>
    %cst_10 = arith.constant 0.000000e+00 : f32
    %13 = vector.broadcast %cst_10 : f32 to vector<8x128xf32>
    %14 = arith.maximumf %12, %13 : vector<8x128xf32>
    %c0_11 = arith.constant 0 : index
    %c0_12 = arith.constant 0 : index
    %15 = vector.load %arg4[%c0_11, %c0_12] : memref<128x128xf32, #tpu.memory_space<vmem>>, vector<128x128xf32>
    %cst_13 = arith.constant dense<0.000000e+00> : vector<8x128xf32>
    %16 = tpu.matmul %14, %15, %cst_13 {dimension_numbers = #tpu.dot_dimension_numbers<[1], [0], [0], [1], [0, 0, 1, 1], [], []>} : vector<8x128xf32>, vector<128x128xf32>, vector<8x128xf32> -> vector<8x128xf32>
    %c0_14 = arith.constant 0 : index
    %c256 = arith.constant 256 : index
    %17 = vector.load %arg5[%c0_14, %c256] : memref<1x384xf32, #tpu.memory_space<vmem>>, vector<1x128xf32>
    %18 = vector.broadcast %17 : vector<1x128xf32> to vector<8x128xf32>
    %19 = arith.addf %16, %18 : vector<8x128xf32>
    %c0_15 = arith.constant 0 : index
    %c0_16 = arith.constant 0 : index
    %20 = vector.load %arg6[%c0_15, %c0_16] : memref<8x128xf32, #tpu.memory_space<vmem>>, vector<8x128xf32>
    tpu.vector_store %arg6[%c0_15, %c0_16], %19 {strides = array<i32>} : memref<8x128xf32, #tpu.memory_space<vmem>>, vector<8x128xf32>,
    return
  }
  func.func @transform_0(%arg0: i32) -> (i32, i32) {
    %c0_i32 = arith.constant 0 : i32
    %c0_i32_0 = arith.constant 0 : i32
    return %arg0, %c0_i32 : i32, i32
  }
  func.func @transform_1(%arg0: i32) -> (i32, i32) {
    %c0_i32 = arith.constant 0 : i32
    %c0_i32_0 = arith.constant 0 : i32
    %c0_i32_1 = arith.constant 0 : i32
    return %c0_i32, %c0_i32_0 : i32, i32
  }
  func.func @transform_2(%arg0: i32) -> (i32, i32) {
    %c0_i32 = arith.constant 0 : i32
    %c0_i32_0 = arith.constant 0 : i32
    %c0_i32_1 = arith.constant 0 : i32
    return %c0_i32, %c0_i32_0 : i32, i32
  }
  func.func @transform_3(%arg0: i32) -> (i32, i32) {
    %c0_i32 = arith.constant 0 : i32
    %c0_i32_0 = arith.constant 0 : i32
    %c0_i32_1 = arith.constant 0 : i32
    return %c0_i32, %c0_i32_0 : i32, i32
  }
  func.func @transform_4(%arg0: i32) -> (i32, i32) {
    %c0_i32 = arith.constant 0 : i32
    %c0_i32_0 = arith.constant 0 : i32
    %c0_i32_1 = arith.constant 0 : i32
    return %c0_i32, %c0_i32_0 : i32, i32
  }
  func.func @transform_5(%arg0: i32) -> (i32, i32) {
    %c0_i32 = arith.constant 0 : i32
    %c0_i32_0 = arith.constant 0 : i32
    return %arg0, %c0_i32 : i32, i32
  }
}

</mosaic_0001>

<bundles_post_ra>
// kernel: net_relu_forward.1
= control target key start
LH: loop header
LB: loop body
LE: loop exit
PB: predicated region body
PF: predicated region fallthrough
CT: control target
= control target key end

     0   :  { %v577_v3 = vmov 0.0|0.0   ;;  %vm578_vm0 = vmmov 0   ;;  %v579_v6 = vmov 0.0   ;;  %s809_s0 = inlined_call_operand.vmem [shape: f32[8,128], index: 0, kind: input, shape index: {}]   ;;  %s810_s1 = inlined_call_operand.vmem [shape: f32[128,128], index: 1, kind: input, shape index: {}]   ;;  %s811_s2 = inlined_call_operand.vmem [shape: f32[128,128], index: 2, kind: input, shape index: {}]   ;;  %s812_s3 = inlined_call_operand.vmem [shape: f32[128,128], index: 3, kind: input, shape index: {}]   ;;  %s813_s4 = inlined_call_operand.vmem [shape: f32[1,384], index: 4, kind: input, shape index: {}]   ;;  %s814_s5 = inlined_call_operand.hbm [shape: f32[8,128], index: 5, kind: output, shape index: {}]  }
   0x1   :  { %v22_v0 = vld [vmem:[%s810_s1] sm:$0xff]  ;;  %v23_v1 = vld [vmem:[%s810_s1 + $0x8] sm:$0xff]  ;;  %v24_v2 = vld [vmem:[%s810_s1 + $0x10] sm:$0xff]  ;;  %477 = vmatprep.subr.bf16.mxu0 %v577_v3  ;;  %404 = vmatprep.mubr.msk.f32.mxu0 %vm578_vm0, %v579_v6 }
   0x2   :  { %v478_v4 = vpack.c.bf16 %v23_v1, %v22_v0  ;;  %v25_v5 = vld [vmem:[%s810_s1 + $0x18] sm:$0xff]  ;;  %501 = vmatprep.subr.bf16.mxu1 %v577_v3  ;;  %439 = vmatprep.mubr.msk.f32.mxu1 %vm578_vm0, %v579_v6  ;;  %v26_v8 = vld [vmem:[%s810_s1 + $0x20] sm:$0xff]  ;;  %v27_v9 = vld [vmem:[%s810_s1 + $0x28] sm:$0xff] }
   0x3   :  { %v481_v7 = vpack.c.bf16 %v25_v5, %v24_v2  ;;  %v116_v10 = vld [vmem:[%s811_s2] sm:$0xff]  ;;  %v117_v11 = vld [vmem:[%s811_s2 + $0x8] sm:$0xff]  ;;  %v118_v12 = vld [vmem:[%s811_s2 + $0x10] sm:$0xff]  ;;  %v484_v14 = vpack.c.bf16 %v27_v9, %v26_v8 }
   0x4   :  { %479 = vmatpush3.bf16.msra.mxu0 %v478_v4  ;;  %v119_v13 = vld [vmem:[%s811_s2 + $0x18] sm:$0xff]  ;;  %v502_v15 = vpack.c.bf16 %v117_v11, %v116_v10  ;;  %v28_v16 = vld [vmem:[%s810_s1 + $0x30] sm:$0xff]  ;;  %v120_v19 = vld [vmem:[%s811_s2 + $0x20] sm:$0xff] }
   0x5   :  { %480 = vmatprep.subr.bf16.mxu0 %v577_v3  ;;  %v29_v17 = vld [vmem:[%s810_s1 + $0x38] sm:$0xff]  ;;  %v505_v18 = vpack.c.bf16 %v119_v13, %v118_v12  ;;  %v121_v20 = vld [vmem:[%s811_s2 + $0x28] sm:$0xff] }
   0x6   :  { %503 = vmatpush3.bf16.msra.mxu1 %v502_v15 }
   0x7   :  { %504 = vmatprep.subr.bf16.mxu1 %v577_v3 }
   0x8   :  { %482 = vmatpush3.bf16.msra.mxu0 %v481_v7 }
   0x9   :  { %483 = vmatprep.subr.bf16.mxu0 %v577_v3 }
   0xa   :  { %10 = vsyncpa [#allocation3], 0  ;;  %v487_v21 = vpack.c.bf16 %v29_v17, %v28_v16  ;;  %v30_v22 = vld [vmem:[%s810_s1 + $0x40] sm:$0xff]  ;;  %v31_v23 = vld [vmem:[%s810_s1 + $0x48] sm:$0xff]  ;;  %506 = vmatpush3.bf16.msra.mxu1 %v505_v18  ;;  %v508_v24 = vpack.c.bf16 %v121_v20, %v120_v19  ;;  %s580_s16 = smov [#allocation2]  }
   0xb   :  { %507 = vmatprep.subr.bf16.mxu1 %v577_v3  ;;  %v122_v25 = vld [vmem:[%s811_s2 + $0x30] sm:$0xff]  ;;  %v123_v26 = vld [vmem:[%s811_s2 + $0x38] sm:$0xff]  ;;  %v490_v27 = vpack.c.bf16 %v31_v23, %v30_v22  ;;  %v124_v31 = vld [vmem:[%s811_s2 + $0x40] sm:$0xff]  ;;  %s310_s17 = sshll.u32 %s580_s16, 4  ;;  %s311_s17 = int_to_ptr.vmem [resolvable:$true] %s310_s17 }
   0xc   :  { %485 = vmatpush3.bf16.msra.mxu0 %v484_v14  ;;  %v32_v28 = vld [vmem:[%s810_s1 + $0x50] sm:$0xff]  ;;  %v33_v29 = vld [vmem:[%s810_s1 + $0x58] sm:$0xff]  ;;  %v511_v30 = vpack.c.bf16 %v123_v26, %v122_v25  ;;  %v125_v32 = vld [vmem:[%s811_s2 + $0x48] sm:$0xff]  ;;  %p558_p1 = scmp.lt.s32.totalorder %s311_s17, %s311_s17 }
   0xd   :  { %486 = vmatprep.subr.bf16.mxu0 %v577_v3  ;;  %v493_v33 = vpack.c.bf16 %v33_v29, %v32_v28  ;;  %v34_v34 = vld [vmem:[%s810_s1 + $0x60] sm:$0xff]  ;;  %v35_v35 = vld [vmem:[%s810_s1 + $0x68] sm:$0xff]  ;;  %v514_v36 = vpack.c.bf16 %v125_v32, %v124_v31  ;;  %v126_v37 = vld [vmem:[%s811_s2 + $0x50] sm:$0xff] }
   0xe   :  { %509 = vmatpush3.bf16.msra.mxu1 %v508_v24  ;;  %v127_v38 = vld [vmem:[%s811_s2 + $0x58] sm:$0xff]  ;;  %v496_v39 = vpack.c.bf16 %v35_v35, %v34_v34  ;;  %v36_v40 = vld [vmem:[%s810_s1 + $0x70] sm:$0xff]  ;;  %v128_v43 = vld [vmem:[%s811_s2 + $0x60] sm:$0xff] }
   0xf   :  { %510 = vmatprep.subr.bf16.mxu1 %v577_v3  ;;  %v37_v41 = vld [vmem:[%s810_s1 + $0x78] sm:$0xff]  ;;  %v517_v42 = vpack.c.bf16 %v127_v38, %v126_v37  ;;  %v129_v44 = vld [vmem:[%s811_s2 + $0x68] sm:$0xff]  ;;  %v21_v47 = vld [vmem:[%s809_s0] sm:$0xff] }
  0x10   :  { %488 = vmatpush3.bf16.msra.mxu0 %v487_v21  ;;  %v499_v45 = vpack.c.bf16 %v37_v41, %v36_v40  ;;  %v520_v46 = vpack.c.bf16 %v129_v44, %v128_v43  ;;  %v130_v48 = vld [vmem:[%s811_s2 + $0x70] sm:$0xff]  ;;  %v131_v49 = vld [vmem:[%s811_s2 + $0x78] sm:$0xff]  ;;  %v210_v51 = vld [vmem:[%s812_s3] sm:$0xff] }
  0x11   :  { %489 = vmatprep.subr.bf16.mxu0 %v577_v3  ;;  %v523_v50 = vpack.c.bf16 %v131_v49, %v130_v48  ;;  %v211_v52 = vld [vmem:[%s812_s3 + $0x8] sm:$0xff]  ;;  %v212_v53 = vld [vmem:[%s812_s3 + $0x10] sm:$0xff]  ;;  %v213_v55 = vld [vmem:[%s812_s3 + $0x18] sm:$0xff] }
  0x12   :  { %512 = vmatpush3.bf16.msra.mxu1 %v511_v30  ;;  %v526_v54 = vpack.c.bf16 %v211_v52, %v210_v51  ;;  %v529_v56 = vpack.c.bf16 %v213_v55, %v212_v53  ;;  %v214_v57 = vld [vmem:[%s812_s3 + $0x20] sm:$0xff]  ;;  %v215_v58 = vld [vmem:[%s812_s3 + $0x28] sm:$0xff]  ;;  %v216_v60 = vld [vmem:[%s812_s3 + $0x30] sm:$0xff] }
  0x13   :  { %513 = vmatprep.subr.bf16.mxu1 %v577_v3  ;;  %v532_v59 = vpack.c.bf16 %v215_v58, %v214_v57  ;;  %v217_v61 = vld [vmem:[%s812_s3 + $0x38] sm:$0xff]  ;;  %v218_v63 = vld [vmem:[%s812_s3 + $0x40] sm:$0xff]  ;;  %v219_v0 = vld [vmem:[%s812_s3 + $0x48] sm:$0xff] }
  0x14   :  { %491 = vmatpush3.bf16.msra.mxu0 %v490_v27  ;;  %v535_v62 = vpack.c.bf16 %v217_v61, %v216_v60  ;;  %v538_v1 = vpack.c.bf16 %v219_v0, %v218_v63  ;;  %v220_v2 = vld [vmem:[%s812_s3 + $0x50] sm:$0xff]  ;;  %v221_v4 = vld [vmem:[%s812_s3 + $0x58] sm:$0xff]  ;;  %v223_v7 = vld [vmem:[%s812_s3 + $0x68] sm:$0xff] }
  0x15   :  { %492 = vmatprep.subr.bf16.mxu0 %v577_v3  ;;  %v541_v5 = vpack.c.bf16 %v221_v4, %v220_v2  ;;  %v318_v9 = vld [vmem:[%s813_s4] ss:$0 sm:$0xff]  ;;  %v224_v14 = vld [vmem:[%s812_s3 + $0x70] sm:$0xff]  ;;  %v225_v15 = vld [vmem:[%s812_s3 + $0x78] sm:$0xff] }
  0x16   :  { %515 = vmatpush3.bf16.msra.mxu1 %v514_v36  ;;  %v547_v16 = vpack.c.bf16 %v225_v15, %v224_v14  ;;  %v320_v21 = vld [vmem:[%s813_s4 + $0x2] ss:$0 sm:$0xff] }
  0x17   :  { %516 = vmatprep.subr.bf16.mxu1 %v577_v3 }
  0x18   :  { %494 = vmatpush3.bf16.msra.mxu0 %v493_v33 }
  0x19   :  { %495 = vmatprep.subr.bf16.mxu0 %v577_v3 }
  0x1a   :  { %518 = vmatpush3.bf16.msra.mxu1 %v517_v42 }
  0x1b   :  { %519 = vmatprep.subr.bf16.mxu1 %v577_v3 }
  0x1c   :  { %497 = vmatpush3.bf16.msra.mxu0 %v496_v39 }
  0x1d   :  { %498 = vmatprep.subr.bf16.mxu0 %v577_v3 }
  0x1e   :  { %521 = vmatpush3.bf16.msra.mxu1 %v520_v46 }
  0x1f   :  { %522 = vmatprep.subr.bf16.mxu1 %v577_v3 }
  0x20   :  { %500 = vmatpush3.bf16.msra.mxu0 %v499_v45 }
  0x21   :  { %525 = vmatprep.subr.bf16.mxu0 %v577_v3 }
  0x22   :  { %524 = vmatpush3.bf16.msra.mxu1 %v523_v50 }
  0x23   :  { %405 = vmatmul.mubr.f32.vlgmr.msra.gmra.mrb[0].mxu0 %v21_v47 }
  0x24   :  { %474 = vmatprep.mubr.msk.f32.mxu0 %vm578_vm0, %v579_v6  ;;  %527 = vmatpush3.bf16.msra.mxu0 %v526_v54  ;;  %v222_v6 = vld [vmem:[%s812_s3 + $0x60] sm:$0xff]  ;;  %s553_s3 = scalar_lea.vmem %s311_s17, 128 }
  0x25   :  { %528 = vmatprep.subr.bf16.mxu0 %v577_v3  ;;  %v544_v8 = vpack.c.bf16 %v223_v7, %v222_v6  ;;  %p554_p0 = scmp.ne.s32.totalorder %s311_s17, %s553_s3  ;;  %p559_p2 = scmp.lt.s32.totalorder %s553_s3, %s553_s3 }
  0x27   :  { %p560_p3 = por %p559_p2, %p558_p1 }
  0x28   :  { %530 = vmatpush3.bf16.msra.mxu0 %v529_v56 }
  0x29   :  { %531 = vmatprep.subr.bf16.mxu0 %v577_v3  ;;  %p561_p4 = pnand %p560_p3, %p554_p0 }
  0x2c   :  { %533 = vmatpush3.bf16.msra.mxu0 %v532_v59 }
  0x2d   :  { %534 = vmatprep.subr.bf16.mxu0 %v577_v3 }
  0x30   :  { %536 = vmatpush3.bf16.msra.mxu0 %v535_v62 }
  0x31   :  { %537 = vmatprep.subr.bf16.mxu0 %v577_v3 }
  0x34   :  { %539 = vmatpush3.bf16.msra.mxu0 %v538_v1 }
  0x35   :  { %540 = vmatprep.subr.bf16.mxu0 %v577_v3 }
  0x38   :  { %542 = vmatpush3.bf16.msra.mxu0 %v541_v5 }
  0x39   :  { %543 = vmatprep.subr.bf16.mxu0 %v577_v3 }
  0x3c   :  { %545 = vmatpush3.bf16.msra.mxu0 %v544_v8 }
  0x3d   :  { %546 = vmatprep.subr.bf16.mxu0 %v577_v3  ;;  %v319_v3 = vld [vmem:[%s813_s4 + $0x1] ss:$0 sm:$0xff] }
  0x40   :  { %548 = vmatpush3.bf16.msra.mxu0 %v547_v16 }
  0xf6   :  { %v111_v10 = vpop.f32.mrb[0].mxu0 }
  0xf7   :  { %v112_v11 = vadd.f32 %v318_v9, %v111_v10  ;;  %v406_v12 = vpop.f32.mrb[1].mxu0 }
  0xf9   :  { %v115_v13 = vmax.f32 %v112_v11, 0.0 }
  0xfb   :  { %440 = vmatmul.mubr.f32.vlgmr.msra.gmra.mrb[0].mxu1 %v115_v13 }
 0x1ce   :  { %v205_v17 = vpop.f32.mrb[0].mxu1 }
 0x1cf   :  { %v206_v18 = vadd.f32 %v319_v3, %v205_v17  ;;  %v441_v19 = vpop.f32.mrb[1].mxu1 }
 0x1d1   :  { %v209_v20 = vmax.f32 %v206_v18, 0.0 }
 0x1d3   :  { %475 = vmatmul.mubr.f32.vlgmr.msra.gmra.mrb[2].mxu0 %v209_v20 }
 0x2a6   :  { %v299_v22 = vpop.f32.mrb[2].mxu0 }
 0x2a7   :  { %v300_v23 = vadd.f32 %v320_v21, %v299_v22  ;;  %v476_v24 = vpop.f32.mrb[3].mxu0 }
 0x2a9   :  { %303 = vst [vmem:[#allocation2] sm:$0xff] %v300_v23 }
 0x2aa   :  { %564 = shalt.err (!%p561_p4)
}
 0x2ab   :  { %s565_s20 = scalar_lea.hbm %s814_s5, 128 }
 0x2ac   :  { %p566_p5 = scmp.ne.s32.totalorder %s814_s5, %s565_s20  ;;  %p569_p6 = scmp.lt.u32.totalorder %s565_s20, %s814_s5 }
 0x2ae   :  { %p571_p7 = pnand %p569_p6, %p566_p5 }
 0x2b0   :  { %574 = shalt.err (!%p571_p7)
}
 0x2b1   :  { %313 = dma.vmem_to_hbm [thread:$0]  %s311_s17, 128, %s814_s5, [#allocation3]  }
 0x2b2   :  { %575 = dma.done.wait [#allocation3], 128  }
 0x2b3   :  { %576 = vsyncadd [#allocation3], 4294967168 }
 0x2b4   :  { %317 = vsyncpa [#allocation3], 1 }

</bundles_post_ra>
